<compile_context>
chip_gen: v6e
topology: v6e:2x2x1
jax: 0.10.0
libtpu: 0.0.40
codegen_flags: <defaults>
</compile_context>

<pallas_src>
import functools

import jax
import jax.numpy as jnp
from jax.experimental import pallas as pl
from jax.experimental.pallas import tpu as pltpu

VMEM_LIMIT = 32 * 1024 * 1024


# ----------------------------------------------------------------------------
# Pallas kernels
# ----------------------------------------------------------------------------
def _mm_kernel(a_ref, b_ref, c_ref, o_ref, acc_ref, *, relu):
    """Tiled matmul (bf16 operands, f32 accum) + bias epilogue, optional ReLU."""
    @pl.when(pl.program_id(2) == 0)
    def _():
        acc_ref[...] = jnp.zeros_like(acc_ref)

    acc_ref[...] += jnp.dot(a_ref[...], b_ref[...],
                            preferred_element_type=jnp.float32)

    @pl.when(pl.program_id(2) == pl.num_programs(2) - 1)
    def _():
        y = acc_ref[...] + c_ref[...]
        if relu:
            y = jnp.maximum(y, 0.0)
        o_ref[...] = y.astype(o_ref.dtype)


def _mm_res_kernel(a_ref, b_ref, c_ref, r_ref, o_ref, acc_ref, *, relu):
    """Same as _mm_kernel but with a fused residual add before the ReLU."""
    @pl.when(pl.program_id(2) == 0)
    def _():
        acc_ref[...] = jnp.zeros_like(acc_ref)

    acc_ref[...] += jnp.dot(a_ref[...], b_ref[...],
                            preferred_element_type=jnp.float32)

    @pl.when(pl.program_id(2) == pl.num_programs(2) - 1)
    def _():
        y = acc_ref[...] + c_ref[...] + r_ref[...]
        if relu:
            y = jnp.maximum(y, 0.0)
        o_ref[...] = y.astype(o_ref.dtype)


def _max9_kernel(x_ref, o_ref):
    # x_ref: (9, tm, C) window taps; reduce over taps.
    o_ref[...] = jnp.max(x_ref[...], axis=0)


def _fc_softmax_kernel(x_ref, w_ref, b_ref, out_ref, sm_ref, *, n_valid):
    logits = jnp.dot(x_ref[...], w_ref[...],
                     preferred_element_type=jnp.float32) + b_ref[...]
    col = jax.lax.broadcasted_iota(jnp.int32, logits.shape, 1)
    masked = jnp.where(col < n_valid, logits, -jnp.inf)
    m = jnp.max(masked, axis=1, keepdims=True)
    e = jnp.where(col < n_valid, jnp.exp(masked - m), 0.0)
    sm = e / jnp.sum(e, axis=1, keepdims=True)
    out_ref[...] = logits
    sm_ref[...] = sm


# ----------------------------------------------------------------------------
# Helpers / wrappers
# ----------------------------------------------------------------------------
def _round_up(x, m):
    return (x + m - 1) // m * m


def _largest_divisor(total_units, cap_units):
    """Largest divisor of total_units that is <= cap_units."""
    best = 1
    for d in range(1, min(total_units, cap_units) + 1):
        if total_units % d == 0:
            best = d
    return best


def _pad2(x, rows, cols, dtype=None):
    if dtype is not None and x.dtype != dtype:
        x = x.astype(dtype)
    pr, pc = rows - x.shape[0], cols - x.shape[1]
    if pr or pc:
        x = jnp.pad(x, ((0, pr), (0, pc)))
    return x


def matmul_bias(a, b, bias, *, relu, residual=None):
    """(M,K) @ (K,N) + bias[N] (+ residual[M,N]), optional ReLU.

    a: f32 activations (cast to bf16 here); b: weights with BN scale already
    folded (cast to bf16 here); bias/residual: f32.  Output: f32.
    """
    M, K = a.shape
    N = b.shape[1]

    # M-adaptive sublane tile; largest lane-aligned divisors for K / N.
    tm = min(128, _round_up(M, 16))
    kp_units = _round_up(K, 128) // 128
    tk = 128 * _largest_divisor(kp_units, 16)      # <= 2048
    np_units = _round_up(N, 128) // 128
    tn = 128 * _largest_divisor(np_units, 8)       # <= 1024 (keeps N=2048 at 2 blocks)

    Mp = _round_up(M, tm)
    Kp = 128 * kp_units
    Np = 128 * np_units

    a_p = _pad2(a, Mp, Kp, jnp.bfloat16)
    b_p = _pad2(b, Kp, Np, jnp.bfloat16)
    c_p = _pad2(bias.reshape(1, N).astype(jnp.float32), 1, Np)

    in_specs = [
        pl.BlockSpec((tm, tk), lambda i, j, k: (i, k)),
        pl.BlockSpec((tk, tn), lambda i, j, k: (k, j)),
        pl.BlockSpec((1, tn), lambda i, j, k: (0, j)),
    ]
    args = [a_p, b_p, c_p]
    if residual is not None:
        r_p = _pad2(residual.astype(jnp.float32), Mp, Np)
        in_specs.append(pl.BlockSpec((tm, tn), lambda i, j, k: (i, j)))
        args.append(r_p)
        kernel = functools.partial(_mm_res_kernel, relu=relu)
    else:
        kernel = functools.partial(_mm_kernel, relu=relu)

    cost = pl.CostEstimate(
        flops=2 * Mp * Np * Kp,
        transcendentals=0,
        bytes_accessed=a_p.size * 2 + b_p.size * 2 + Mp * Np * 4)

    out = pl.pallas_call(
        kernel,
        out_shape=jax.ShapeDtypeStruct((Mp, Np), jnp.float32),
        grid_spec=pltpu.PrefetchScalarGridSpec(
            num_scalar_prefetch=0,
            grid=(Mp // tm, Np // tn, Kp // tk),
            in_specs=in_specs,
            out_specs=pl.BlockSpec((tm, tn), lambda i, j, k: (i, j)),
            scratch_shapes=[pltpu.VMEM((tm, tn), jnp.float32)],
        ),
        compiler_params=pltpu.CompilerParams(
            dimension_semantics=("parallel", "parallel", "arbitrary"),
            vmem_limit_bytes=VMEM_LIMIT),
        cost_estimate=cost,
    )(*args)
    return out[:M, :N]


def conv_bn(x, w, scale, bias, stride, padding, relu, residual=None):
    """NHWC conv with torch-layout weight (Cout,Cin,KH,KW) via im2col matmul.

    BN scale is folded into the weight matrix; the optional residual tensor
    (NHWC, same output shape) is added in the matmul epilogue before ReLU.
    """
    B, H, W, Cin = x.shape
    Cout, _, KH, KW = w.shape
    Ho = (H + 2 * padding - KH) // stride + 1
    Wo = (W + 2 * padding - KW) // stride + 1
    xp = x if padding == 0 else jnp.pad(
        x, ((0, 0), (padding, padding), (padding, padding), (0, 0)))
    if KH == 1 and KW == 1:
        a = xp[:, ::stride, ::stride, :][:, :Ho, :Wo, :].reshape(B * Ho * Wo, Cin)
    else:
        # TODO(synk): read the (kh,kw) taps inside the matmul kernel via the A
        # BlockSpec index_map instead of materializing the im2col matrix in HBM.
        cols = []
        for kh in range(KH):
            for kw in range(KW):
                cols.append(xp[:, kh:kh + stride * (Ho - 1) + 1:stride,
                               kw:kw + stride * (Wo - 1) + 1:stride, :])
        a = jnp.stack(cols, axis=3).reshape(B * Ho * Wo, KH * KW * Cin)
    # Fold BN scale into the weight matrix: (A@W)*s == A@(W*s).
    wm = jnp.transpose(w, (2, 3, 1, 0)).reshape(KH * KW * Cin, Cout) * scale[None, :]
    res = None if residual is None else residual.reshape(B * Ho * Wo, Cout)
    out = matmul_bias(a, wm, bias, relu=relu, residual=res)
    return out.reshape(B, Ho, Wo, Cout)


def maxpool3x3s2(x):
    B, H, W, C = x.shape
    Ho = (H + 2 - 3) // 2 + 1
    Wo = (W + 2 - 3) // 2 + 1
    xp = jnp.pad(x, ((0, 0), (1, 1), (1, 1), (0, 0)),
                 constant_values=-jnp.inf)
    cols = []
    for kh in range(3):
        for kw in range(3):
            cols.append(xp[:, kh:kh + 2 * (Ho - 1) + 1:2,
                           kw:kw + 2 * (Wo - 1) + 1:2, :])
    M = B * Ho * Wo
    stacked = jnp.stack(cols, axis=0).reshape(9, M, C)
    tm = min(512, _round_up(M, 8))
    Mp = _round_up(M, tm)
    Cp = _round_up(C, 128)
    sp = jnp.pad(stacked, ((0, 0), (0, Mp - M), (0, Cp - C)))
    out = pl.pallas_call(
        _max9_kernel,
        out_shape=jax.ShapeDtypeStruct((Mp, Cp), jnp.float32),
        grid_spec=pltpu.PrefetchScalarGridSpec(
            num_scalar_prefetch=0,
            grid=(Mp // tm,),
            in_specs=[pl.BlockSpec((9, tm, Cp), lambda i: (0, i, 0))],
            out_specs=pl.BlockSpec((tm, Cp), lambda i: (i, 0)),
        ),
        compiler_params=pltpu.CompilerParams(
            dimension_semantics=("parallel",),
            vmem_limit_bytes=VMEM_LIMIT),
    )(sp)
    return out[:M, :C].reshape(B, Ho, Wo, C)


def fc_softmax(x, w, b):
    # Tiny (B x 2048 x num_classes) — whole-array VMEM kernel is fine here.
    B, _ = x.shape
    N = w.shape[1]
    Bp = _round_up(B, 8)
    Np = _round_up(N, 128)
    x_p = _pad2(x, Bp, x.shape[1])
    w_p = _pad2(w, w.shape[0], Np)
    b_p = _pad2(b.reshape(1, N), 1, Np)
    out_p, sm_p = pl.pallas_call(
        functools.partial(_fc_softmax_kernel, n_valid=N),
        out_shape=(jax.ShapeDtypeStruct((Bp, Np), jnp.float32),
                   jax.ShapeDtypeStruct((Bp, Np), jnp.float32)),
    )(x_p, w_p, b_p)
    return out_p[:B, :N], sm_p[:B, :N]


# ----------------------------------------------------------------------------
# ResNet-50 parameters (synthetic, deterministic)
# ----------------------------------------------------------------------------
def _conv_init(key, cout, cin, kh, kw):
    fan_in = cin * kh * kw
    std = (2.0 / fan_in) ** 0.5
    return jax.random.normal(key, (cout, cin, kh, kw), jnp.float32) * std


def _bn_fold(c):
    # eval-mode fold: gamma=1, beta=0, running_mean=0, running_var=1, eps=1e-5
    scale = jnp.full((c,), 1.0 / jnp.sqrt(1.0 + 1e-5), jnp.float32)
    bias = jnp.zeros((c,), jnp.float32)
    return scale, bias


def make_params(key, num_classes=31):
    keys = iter(jax.random.split(key, 256))
    params = {}
    params['conv1_w'] = _conv_init(next(keys), 64, 3, 7, 7)
    params['bn1_s'], params['bn1_b'] = _bn_fold(64)
    cfg = [(64, 3, 1), (128, 4, 2), (256, 6, 2), (512, 3, 2)]
    in_c = 64
    layers = []
    for planes, nblocks, stride in cfg:
        blocks = []
        for bi in range(nblocks):
            s = stride if bi == 0 else 1
            blk = {
                'w1': _conv_init(next(keys), planes, in_c, 1, 1),
                'w2': _conv_init(next(keys), planes, planes, 3, 3),
                'w3': _conv_init(next(keys), planes * 4, planes, 1, 1),
            }
            blk['s1'], blk['b1'] = _bn_fold(planes)
            blk['s2'], blk['b2'] = _bn_fold(planes)
            blk['s3'], blk['b3'] = _bn_fold(planes * 4)
            if s != 1 or in_c != planes * 4:
                blk['wd'] = _conv_init(next(keys), planes * 4, in_c, 1, 1)
                blk['sd'], blk['bd'] = _bn_fold(planes * 4)
            blocks.append(blk)
            in_c = planes * 4
        layers.append({'stride': stride, 'blocks': blocks})
    params['layers'] = layers
    params['fc_w'] = jax.random.normal(
        next(keys), (2048, num_classes), jnp.float32) * (1.0 / 2048) ** 0.5
    params['fc_b'] = jnp.zeros((num_classes,), jnp.float32)
    return params


# ----------------------------------------------------------------------------
# Forward pass
# ----------------------------------------------------------------------------
def bottleneck(x, p, stride):
    if 'wd' in p:
        identity = conv_bn(x, p['wd'], p['sd'], p['bd'], stride, 0, relu=False)
    else:
        identity = x
    out = conv_bn(x, p['w1'], p['s1'], p['b1'], 1, 0, relu=True)
    out = conv_bn(out, p['w2'], p['s2'], p['b2'], stride, 1, relu=True)
    # Residual add + ReLU fused into the third conv's matmul epilogue.
    out = conv_bn(out, p['w3'], p['s3'], p['b3'], 1, 0, relu=True,
                  residual=identity)
    return out


def resnet50_forward(x_nchw, params):
    x = jnp.transpose(x_nchw, (0, 2, 3, 1))  # NCHW -> NHWC
    x = conv_bn(x, params['conv1_w'], params['bn1_s'], params['bn1_b'],
                stride=2, padding=3, relu=True)
    x = maxpool3x3s2(x)
    for layer in params['layers']:
        for bi, blk in enumerate(layer['blocks']):
            x = bottleneck(x, blk, layer['stride'] if bi == 0 else 1)
    # Global average pool (spatial is 1x1 at this input size) — plain-JAX glue.
    feature = jnp.mean(x, axis=(1, 2))                 # (B, 2048)
    out, softmax_out = fc_softmax(feature, params['fc_w'], params['fc_b'])
    return feature, out, softmax_out


if __name__ == "__main__":
    key = jax.random.PRNGKey(0)
    pkey, xkey = jax.random.split(key)
    params = make_params(pkey, num_classes=31)
    # Small input consistent with the module: NCHW, 3 channels, 32x32 spatial
    # (32x32 is the minimum that survives ResNet-50's /32 downsampling).
    x = jax.random.normal(xkey, (2, 3, 32, 32), jnp.float32)
    feature, out, softmax_out = resnet50_forward(x, params)
    jax.block_until_ready((feature, out, softmax_out))
    assert feature.shape == (2, 2048)
    assert out.shape == (2, 31)
    assert softmax_out.shape == (2, 31)
    assert bool(jnp.all(jnp.isfinite(softmax_out)))
    print("KERNEL_OK")
</pallas_src>

<mosaic_0001>
module attributes {stable_mosaic.version = 11 : i64} {
  func.func @_mm_kernel(%arg0: i32, %arg1: i32, %arg2: i32, %arg3: memref<128x256xbf16, #tpu.memory_space<vmem>>, %arg4: memref<256x128xbf16, #tpu.memory_space<vmem>>, %arg5: memref<1x128xf32, #tpu.memory_space<vmem>>, %arg6: memref<128x128xf32, #tpu.memory_space<vmem>>, %arg7: memref<128x128xf32, #tpu.memory_space<vmem>>) attributes {dimension_semantics = [#tpu.dimension_semantics<parallel>, #tpu.dimension_semantics<parallel>, #tpu.dimension_semantics<arbitrary>], iteration_bounds = array<i64: 4, 1, 1>, scalar_prefetch = 0 : i64, scratch_operands = 1 : i64, tpu.core_type = #tpu.core_type<tc>, window_params = [{transform_indices = @transform_0, window_bounds = array<i64: 128, 256>}, {transform_indices = @transform_1, window_bounds = array<i64: 256, 128>}, {transform_indices = @transform_2, window_bounds = array<i64: 1, 128>}, {transform_indices = @transform_3, window_bounds = array<i64: 128, 128>}]} {
    %c0_i32 = arith.constant 0 : i32
    %0 = arith.cmpi eq, %arg2, %c0_i32 : i32
    %1 = arith.extui %0 : i1 to i32
    %c0_i32_0 = arith.constant 0 : i32
    %2 = arith.cmpi ne, %1, %c0_i32_0 : i32
    scf.if %2 {
      %cst_10 = arith.constant 0.000000e+00 : f32
      %12 = vector.broadcast %cst_10 : f32 to vector<128x128xf32>
      %c0_11 = arith.constant 0 : index
      %c0_12 = arith.constant 0 : index
      %13 = vector.load %arg7[%c0_11, %c0_12] : memref<128x128xf32, #tpu.memory_space<vmem>>, vector<128x128xf32>
      tpu.vector_store %arg7[%c0_11, %c0_12], %12 {strides = array<i32>} : memref<128x128xf32, #tpu.memory_space<vmem>>, vector<128x128xf32>,
    } else {
    }
    %c0 = arith.constant 0 : index
    %c0_1 = arith.constant 0 : index
    %3 = vector.load %arg7[%c0, %c0_1] : memref<128x128xf32, #tpu.memory_space<vmem>>, vector<128x128xf32>
    %c0_2 = arith.constant 0 : index
    %c0_3 = arith.constant 0 : index
    %4 = vector.load %arg3[%c0_2, %c0_3] : memref<128x256xbf16, #tpu.memory_space<vmem>>, vector<128x256xbf16>
    %c0_4 = arith.constant 0 : index
    %c0_5 = arith.constant 0 : index
    %5 = vector.load %arg4[%c0_4, %c0_5] : memref<256x128xbf16, #tpu.memory_space<vmem>>, vector<256x128xbf16>
    %cst = arith.constant dense<0.000000e+00> : vector<128x128xf32>
    %6 = tpu.matmul %4, %5, %cst {dimension_numbers = #tpu.dot_dimension_numbers<[1], [0], [0], [1], [0, 0, 1, 1], [], []>} : vector<128x256xbf16>, vector<256x128xbf16>, vector<128x128xf32> -> vector<128x128xf32>
    %7 = arith.addf %3, %6 : vector<128x128xf32>
    %c0_6 = arith.constant 0 : index
    %c0_7 = arith.constant 0 : index
    %8 = vector.load %arg7[%c0_6, %c0_7] : memref<128x128xf32, #tpu.memory_space<vmem>>, vector<128x128xf32>
    tpu.vector_store %arg7[%c0_6, %c0_7], %7 {strides = array<i32>} : memref<128x128xf32, #tpu.memory_space<vmem>>, vector<128x128xf32>,
    %c0_i32_8 = arith.constant 0 : i32
    %9 = arith.cmpi eq, %arg2, %c0_i32_8 : i32
    %10 = arith.extui %9 : i1 to i32
    %c0_i32_9 = arith.constant 0 : i32
    %11 = arith.cmpi ne, %10, %c0_i32_9 : i32
    scf.if %11 {
      %c0_10 = arith.constant 0 : index
      %c0_11 = arith.constant 0 : index
      %12 = vector.load %arg7[%c0_10, %c0_11] : memref<128x128xf32, #tpu.memory_space<vmem>>, vector<128x128xf32>
      %c0_12 = arith.constant 0 : index
      %c0_13 = arith.constant 0 : index
      %13 = vector.load %arg5[%c0_12, %c0_13] : memref<1x128xf32, #tpu.memory_space<vmem>>, vector<1x128xf32>
      %14 = vector.broadcast %13 : vector<1x128xf32> to vector<128x128xf32>
      %15 = arith.addf %12, %14 : vector<128x128xf32>
      %cst_14 = arith.constant 0.000000e+00 : f32
      %16 = vector.broadcast %cst_14 : f32 to vector<128x128xf32>
      %17 = arith.maximumf %15, %16 : vector<128x128xf32>
      %c0_15 = arith.constant 0 : index
      %c0_16 = arith.constant 0 : index
      %18 = vector.load %arg6[%c0_15, %c0_16] : memref<128x128xf32, #tpu.memory_space<vmem>>, vector<128x128xf32>
      tpu.vector_store %arg6[%c0_15, %c0_16], %17 {strides = array<i32>} : memref<128x128xf32, #tpu.memory_space<vmem>>, vector<128x128xf32>,
    } else {
    }
    return
  }
  func.func @transform_0(%arg0: i32, %arg1: i32, %arg2: i32) -> (i32, i32) {
    %c0_i32 = arith.constant 0 : i32
    return %arg0, %arg2 : i32, i32
  }
  func.func @transform_1(%arg0: i32, %arg1: i32, %arg2: i32) -> (i32, i32) {
    %c0_i32 = arith.constant 0 : i32
    return %arg2, %arg1 : i32, i32
  }
  func.func @transform_2(%arg0: i32, %arg1: i32, %arg2: i32) -> (i32, i32) {
    %c0_i32 = arith.constant 0 : i32
    %c0_i32_0 = arith.constant 0 : i32
    return %c0_i32, %arg1 : i32, i32
  }
  func.func @transform_3(%arg0: i32, %arg1: i32, %arg2: i32) -> (i32, i32) {
    %c0_i32 = arith.constant 0 : i32
    return %arg0, %arg1 : i32, i32
  }
}

</mosaic_0001>

<bundles_post_ra>
// kernel: tpu_custom_call.1
= control target key start
LH: loop header
LB: loop body
LE: loop exit
PB: predicated region body
PF: predicated region fallthrough
CT: control target
= control target key end

     0   :  { %8 = vsyncpa [#allocation4], 0  ;;  %s1517_s0 = inlined_call_operand.hbm [shape: bf16[512,256], index: 0, kind: input, shape index: {}]   ;;  %s1518_s1 = inlined_call_operand.hbm [shape: bf16[256,128], index: 1, kind: input, shape index: {}]   ;;  %s1519_s2 = inlined_call_operand.vmem [shape: f32[1,128], index: 2, kind: input, shape index: {}]   ;;  %s1520_s3 = inlined_call_operand.hbm [shape: f32[512,128], index: 3, kind: output, shape index: {}]  }
   0x1   :  { %10 = vsyncpa [#allocation4 + $0x1], 0 }
   0x2   :  { %11 = vsyncpa [#allocation7], 0 }
   0x3   :  { %12 = vsyncpa [#allocation5], 0 }
   0x4   :  { %14 = vsyncpa [#allocation5 + $0x1], 0  ;;  %s1276_s12 = smov 0   ;;  %s1278_s13 = smov 0  }
   0x5   :  { %s1280_s14 = smov 0   ;;  %s1282_s15 = smov 0  }
   0x6   :  { %s1284_s16 = smov 0   ;;  %s1286_s17 = smov 0  }
   0x7 LB: > { %s853_s18 = sadd.s32 4294967295, %s1245_s17   ;;  %s854_s19 = sadd.s32 4294967294, %s1245_s17   ;;  %s1245_s17 = sphi %s1286_s17, %s20_s17   ;;  %s1241_s16 = sphi %s1284_s16, %s1537_s16   ;;  %s1237_s15 = sphi %s1282_s15, %s1536_s15   ;;  %s1233_s14 = sphi %s1280_s14, %s1535_s14   ;;  %s1229_s13 = sphi %s1278_s13, %s1534_s13   ;;  %s1225_s12 = sphi %s1276_s12, %s1533_s12  }
   0x8   : > { %p61_p0 = scmp.ne.s32.totalorder %s1229_s13, %s1225_s12  ;;  %p1310_p1 = scmp.eq.s32.totalorder %s853_s18, 0 }
   0x9   : > { %p1314_p2 = scmp.eq.s32.totalorder %s853_s18, 3  ;;  %p147_p3 = scmp.eq.s32.totalorder %s854_s19, 3 }
   0xa   : > { %p1320_p4 = por %p1310_p1, %p61_p0  ;;  %p855_p5 = scmp.ge.s32.totalorder %s1245_s17, 1 }
   0xb   : > { %p1325_p6 = por %p147_p3, %p61_p0  ;;  %p154_p7 = scmp.lt.s32.totalorder %s1245_s17, 5 }
   0xc   : > { %s1247_s25 = smov [#allocation6]   ;;  %s39_s28 = sadd.s32 1, %s1241_s16 }
   0xd   : > { %s1525_s23 = scalar_select %p1325_p6, 1, 0 }
   0xe   : > { %p1330_p8 = pnand %p855_p5, %p154_p7  ;;  %s170_s26 = sshll.u32 %s1247_s25, 4  ;;  %s171_s26 = int_to_ptr.vmem [resolvable:$true] %s170_s26 }
   0xf   : > { %s1118_s29 = scalar_lea.vmem %s171_s26, 2048  ;;  %p1126_p3 = scmp.lt.s32.totalorder %s171_s26, %s171_s26 }
  0x10   : > { %p996_p9 = pneg %p1330_p8  ;;  %p1119_p12 = scmp.ne.s32.totalorder %s171_s26, %s1118_s29 }
  0x11   : > { %p1127_p5 = scmp.lt.s32.totalorder %s1118_s29, %s1118_s29 }
  0x12   : > { %p1338_p10 = pnand %p996_p9, %p1310_p1 }
  0x13   : > { %p1128_p7 = por %p1127_p5, %p1126_p3 }
  0x14   : > { %p1109_p11 = pneg %p1338_p10 }
  0x16   : > { %p1121_p13 = pnand %p1119_p12, %p1109_p11 }
  0x18   : > { %p1122_p0 = pneg %p1121_p13 }
  0x1a   : > { %p1129_p6 = pnand %p1128_p7, %p1122_p0 }
  0x1c   : > { %1132 = shalt.err (!%p1129_p6)
}
  0x1d   : > { %s1248_s30 = smov 64   ;;  %s1249_s4 = smov 4  }
  0x1e   : > { %999 = dma.hbm_to_vmem [thread:$0]  (!%p1338_p10), %s1518_s1, 2048, %s171_s26, [#allocation7], %s1248_s30, %s1248_s30, %s1249_s4  }
  0x1f   : > { %p41_p9 = scmp.ge.s32.totalorder %s39_s28, 4  ;;  %s48_s7 = sadd.s32 1, %s1233_s14 }
  0x20   : > { %p55_p6 = scmp.ne.s32.totalorder %s1233_s14, %s1229_s13  ;;  %p56_p11 = scmp.eq.s32.totalorder %s1245_s17, 0 }
  0x21   : > { %s1539_s28 = smov (%p41_p9, %s39_s28), 0  ;;  %p1009_p0 = scmp.lt.s32.totalorder %s1245_s17, 4 }
  0x22   : > { %p1356_p12 = por %p56_p11, %p55_p6  ;;  %p1362_p13 = por %p1314_p2, %p55_p6 }
  0x23   : > { %s43_s10 = ssub.s32 %s1241_s16, %s1539_s28  ;;  %s190_s11 = sand.u32 1, %s1233_s14  }
  0x24   : > { %s1529_s9 = scalar_select %p1362_p13, 1, 0 }
  0x25   : > { %p46_p10 = scmp.eq.s32.totalorder %s43_s10, 0  ;;  %s859_s18 = sshll.u32 %s190_s11, 7 }
  0x26   : > { %s906_s25 = sshll.u32 %s1241_s16, 11  ;;  %s194_s30 = scalar_lea.vmem [#allocation3], %s859_s18 }
  0x27   : > { %s1371_s19 = scalar_select %p46_p10, %s1233_s14, %s48_s7  }
  0x28   : > { %s203_s29 = scalar_lea.hbm %s1517_s0, %s906_s25  ;;  %s204_s4 = sshll.u32 %s194_s30, 4  ;;  %s205_s4 = int_to_ptr.vmem [resolvable:$true] %s204_s4 }
  0x29   : > { %p1379_p2 = pnand %p1009_p0, %p1356_p12  ;;  %s191_s5 = scalar_lea.sflag [#allocation4], %s190_s11 }
  0x2a   : > { %s1146_s6 = scalar_lea.vmem %s205_s4, 2048  ;;  %s1250_s7 = smov [#allocation3]  }
  0x2b   : > { %p1135_p3 = pneg %p1379_p2  ;;  %p1147_p5 = scmp.ne.s32.totalorder %s205_s4, %s1146_s6 }
  0x2c   : > { %s1151_s10 = sshll.u32 %s1250_s7, 4  ;;  %s1152_s10 = int_to_ptr.vmem [resolvable:$false] %s1151_s10 }
  0x2d   : > { %p1149_p7 = pnand %p1147_p5, %p1135_p3  ;;  %s1153_s25 = scalar_lea.vmem %s1152_s10, 4096 }
  0x2e   : > { %p1154_p6 = scmp.lt.s32.totalorder %s205_s4, %s1152_s10  ;;  %p1155_p11 = scmp.lt.s32.totalorder %s1153_s25, %s1146_s6 }
  0x2f   : > { %p1150_p9 = pneg %p1149_p7 }
  0x30   : > { %p1156_p10 = por %p1155_p11, %p1154_p6 }
  0x32   : > { %p1157_p13 = pnand %p1156_p10, %p1150_p9 }
  0x34   : > { %1160 = shalt.err (!%p1157_p13)
}
  0x35   : > { %s1251_s8 = smov 128   ;;  %s1252_s18 = smov 8  }
  0x36   : > { %1003 = dma.hbm_to_vmem [thread:$0]  (!%p1379_p2), %s203_s29, 2048, %s205_s4, %s191_s5, %s1251_s8, %s1251_s8, %s1252_s18  }
  0x37   : > { %216 = sbr.rel (%p1330_p8) target bundleno = 339 (0x153), region = 32  ;;  %s1390_s11 = sand.u32 (!%p1330_p8), 1, %s1229_s13  }
  0x38   : > { %s864_s26 = sshll.u32 (!%p1330_p8), %s1390_s11, 7  ;;  %s219_s27 = scalar_lea.sflag (!%p1330_p8), [#allocation4], %s1390_s11 }
  0x39   : > { %s1396_s30 = scalar_lea.vmem (!%p1330_p8), [#allocation3], %s864_s26 }
  0x3c   : > { %1212 = dma.done.wait (%p1320_p4), %s219_s27, 2048  }
  0x3d   : > { %1214 = vsyncadd (%p1320_p4), %s219_s27, 4294965248 }
  0x3e   : > { %1216 = dma.done.wait (%p1310_p1), [#allocation7], 2048  }
  0x3f   : > { %1218 = vsyncadd (%p1310_p1), [#allocation7], 4294965248  ;;  %v1067_v0 = vld [vmem:[#allocation6 + $0x78] sm:$0xff]   ;;  %v1069_v2 = vld [vmem:[#allocation6 + $0x70] sm:$0xff]   ;;  %s1431_s24 = scalar_lea.vmem [#allocation8], %s864_s26  ;;  %s907_s29 = sshll.u32 %s1237_s15, 11 }
  0x40   : > { %v1068_v1 = vld [vmem:[#allocation6 + $0x38] sm:$0xff]   ;;  %908 = vmatprep.subr.bf16.mxu0 %v1067_v0  ;;  %972 = vmatprep.subr.bf16.mxu1 %v1067_v0  ;;  %v1070_v3 = vld [vmem:[#allocation6 + $0x30] sm:$0xff]   ;;  %v1071_v4 = vld [vmem:[#allocation6 + $0x68] sm:$0xff]   ;;  %s738_s4 = sshll.u32 %s1431_s24, 4  ;;  %s1466_s6 = scalar_lea.hbm %s1520_s3, %s907_s29  ;;  %s1468_s4 = int_to_ptr.vmem [resolvable:$true] %s738_s4 }
  0x41   : > { %909 = vmatpush3.bf16.msra.mxu0 %v1068_v1  ;;  %980 = vmatpush3.bf16.msra.mxu1 %v1068_v1  ;;  %v1072_v5 = vld [vmem:[#allocation6 + $0x28] sm:$0xff]   ;;  %v1073_v6 = vld [vmem:[#allocation6 + $0x60] sm:$0xff]   ;;  %v1075_v8 = vld [vmem:[#allocation6 + $0x58] sm:$0xff]   ;;  %s724_s15 = scalar_lea.sflag [#allocation5], %s1390_s11  ;;  %s1161_s7 = scalar_lea.vmem %s1468_s4, 2048 }
  0x42   : > { %910 = vmatprep.subr.bf16.mxu0 %v1069_v2  ;;  %973 = vmatprep.subr.bf16.mxu1 %v1069_v2  ;;  %v1074_v7 = vld [vmem:[#allocation6 + $0x20] sm:$0xff]   ;;  %v1076_v9 = vld [vmem:[#allocation6 + $0x18] sm:$0xff]   ;;  %v1077_v10 = vld [vmem:[#allocation6 + $0x50] sm:$0xff]   ;;  %p1162_p1 = scmp.ne.s32.totalorder %s1468_s4, %s1161_s7  ;;  %p1531_p4 = scmp.ne.s32.totalorder %s1529_s9, 0 }
  0x43   : > { %v1085_v11 = vld [vmem:[%s1396_s30 + $0x4] ss:$8 sps:$4 sm:$0xff]   ;;  %v1078_v13 = vld [vmem:[#allocation6 + $0x10] sm:$0xff]   ;;  %v1083_v18 = vld [vmem:[%s1396_s30] ss:$8 sps:$4 sm:$0xff]   ;;  %s1253_s10 = smov [#allocation8]  }
  0x44   : > { %v1088_v12 = vld [vmem:[%s1396_s30 + $0x44] ss:$8 sps:$4 sm:$0xff]   ;;  %552 = vmatprep.mubr.bf16.mxu0 %v1085_v11  ;;  %v1086_v19 = vld [vmem:[%s1396_s30 + $0x40] ss:$8 sps:$4 sm:$0xff]   ;;  %v1089_v20 = vld [vmem:[%s1396_s30 + $0x14] ss:$8 sps:$4 sm:$0xff]   ;;  %p1163_p8 = pnand %p1162_p1, %p1531_p4 }
  0x45   : > { %911 = vmatpush3.bf16.msra.mxu0 %v1070_v3  ;;  %981 = vmatpush3.bf16.msra.mxu1 %v1070_v3  ;;  %v1079_v14 = vld [vmem:[#allocation6 + $0x48] sm:$0xff]   ;;  %v1081_v16 = vld [vmem:[#allocation6 + $0x40] sm:$0xff]   ;;  %v1091_v21 = vld [vmem:[%s1396_s30 + $0x54] ss:$8 sps:$4 sm:$0xff]   ;;  %s1165_s25 = sshll.u32 %s1253_s10, 4  ;;  %s1166_s25 = int_to_ptr.vmem [resolvable:$false] %s1165_s25 }
  0x46   : > { %912 = vmatprep.subr.bf16.mxu0 %v1071_v4  ;;  %974 = vmatprep.subr.bf16.mxu1 %v1071_v4  ;;  %v1080_v15 = vld [vmem:[#allocation6 + $0x8] sm:$0xff]   ;;  %v1082_v17 = vld [vmem:[#allocation6] sm:$0xff]   ;;  %v1093_v22 = vld [vmem:[%s1396_s30 + $0x10] ss:$8 sps:$4 sm:$0xff]   ;;  %p1164_p12 = pneg %p1163_p8  ;;  %s1167_s8 = scalar_lea.vmem %s1166_s25, 4096 }
  0x47   : > { %584 = vmatprep.mubr.bf16.mxu1 %v1088_v12  ;;  %v1094_v23 = vld [vmem:[%s1396_s30 + $0x50] ss:$8 sps:$4 sm:$0xff]   ;;  %v1095_v24 = vld [vmem:[%s1396_s30 + $0x24] ss:$8 sps:$4 sm:$0xff]   ;;  %v1099_v26 = vld [vmem:[%s1396_s30 + $0x20] ss:$8 sps:$4 sm:$0xff]   ;;  %p1168_p13 = scmp.lt.s32.totalorder %s1468_s4, %s1166_s25  ;;  %p1169_p0 = scmp.lt.s32.totalorder %s1167_s8, %s1161_s7 }
  0x48   : > { %v1097_v25 = vld [vmem:[%s1396_s30 + $0x64] ss:$8 sps:$4 sm:$0xff]   ;;  %v1100_v27 = vld [vmem:[%s1396_s30 + $0x60] ss:$8 sps:$4 sm:$0xff]   ;;  %v1101_v28 = vld [vmem:[%s1396_s30 + $0x34] ss:$8 sps:$4 sm:$0xff]  }
  0x49   : > { %913 = vmatpush3.bf16.msra.mxu0 %v1072_v5  ;;  %982 = vmatpush3.bf16.msra.mxu1 %v1072_v5  ;;  %v1103_v29 = vld [vmem:[%s1396_s30 + $0x74] ss:$8 sps:$4 sm:$0xff]   ;;  %v1105_v30 = vld [vmem:[%s1396_s30 + $0x30] ss:$8 sps:$4 sm:$0xff]   ;;  %v1425_v35 = vld [vmem:[%s1519_s2] ss:$0 sm:$0xff]  ;;  %p1170_p2 = por %p1169_p0, %p1168_p13 }
  0x4a   : > { %914 = vmatprep.subr.bf16.mxu0 %v1073_v6  ;;  %975 = vmatprep.subr.bf16.mxu1 %v1073_v6  ;;  %v1106_v31 = vld [vmem:[%s1396_s30 + $0x70] ss:$8 sps:$4 sm:$0xff]  }
  0x4b   : > { %p1171_p3 = pnand %p1170_p2, %p1164_p12 }
  0x4d   : > { %915 = vmatpush3.bf16.msra.mxu0 %v1074_v7  ;;  %983 = vmatpush3.bf16.msra.mxu1 %v1074_v7 }
  0x4e   : > { %916 = vmatprep.subr.bf16.mxu0 %v1075_v8  ;;  %976 = vmatprep.subr.bf16.mxu1 %v1075_v8 }
  0x51   : > { %917 = vmatpush3.bf16.msra.mxu0 %v1076_v9  ;;  %984 = vmatpush3.bf16.msra.mxu1 %v1076_v9 }
  0x52   : > { %918 = vmatprep.subr.bf16.mxu0 %v1077_v10  ;;  %977 = vmatprep.subr.bf16.mxu1 %v1077_v10 }
  0x55   : > { %919 = vmatpush3.bf16.msra.mxu0 %v1078_v13  ;;  %985 = vmatpush3.bf16.msra.mxu1 %v1078_v13 }
  0x56   : > { %920 = vmatprep.subr.bf16.mxu0 %v1079_v14  ;;  %978 = vmatprep.subr.bf16.mxu1 %v1079_v14 }
  0x59   : > { %921 = vmatpush3.bf16.msra.mxu0 %v1080_v15  ;;  %986 = vmatpush3.bf16.msra.mxu1 %v1080_v15 }
  0x5a   : > { %922 = vmatprep.subr.bf16.mxu0 %v1081_v16  ;;  %979 = vmatprep.subr.bf16.mxu1 %v1081_v16 }
  0x5d   : > { %923 = vmatpush3.bf16.msra.mxu0 %v1082_v17  ;;  %987 = vmatpush3.bf16.msra.mxu1 %v1082_v17 }
  0x60   : > { %553 = vmatmul.mubr.bf16.vlgmr.msra.gmra.mxu0 %v1083_v18  ;;  %585 = vmatmul.mubr.bf16.vlgmr.msra.gmra.mxu1 %v1086_v19 }
  0x61   : > { %560 = vmatprep.mubr.bf16.mxu0 %v1089_v20  ;;  %592 = vmatprep.mubr.bf16.mxu1 %v1091_v21 }
  0x68   : > { %561 = vmatmul.mubr.bf16.gmra.mxu0 %v1093_v22  ;;  %593 = vmatmul.mubr.bf16.gmra.mxu1 %v1094_v23 }
  0x69   : > { %568 = vmatprep.mubr.bf16.mxu0 %v1095_v24  ;;  %600 = vmatprep.mubr.bf16.mxu1 %v1097_v25 }
  0x70   : > { %569 = vmatmul.mubr.bf16.gmra.mxu0 %v1099_v26  ;;  %601 = vmatmul.mubr.bf16.gmra.mxu1 %v1100_v27 }
  0x71   : > { %576 = vmatprep.mubr.bf16.mxu0 %v1101_v28  ;;  %608 = vmatprep.mubr.bf16.mxu1 %v1103_v29 }
  0x78   : > { %577 = vmatmul.mubr.bf16.gmra.mxu0 %v1105_v30  ;;  %609 = vmatmul.mubr.bf16.gmra.mxu1 %v1106_v31 }
 0x120   : > { %v924_v32 = vpop.f32.mrf.mxu0  ;;  %v948_v33 = vpop.f32.mrf.mxu1 }
 0x122   : > { %v925_v34 = vpop.f32.mrf.mxu0  ;;  %v949_v36 = vpop.f32.mrf.mxu1 }
 0x123   : > { %v926_v37 = vadd.f32 %v925_v34, %v924_v32  ;;  %v950_v38 = vadd.f32 %v949_v36, %v948_v33 }
 0x124   : > { %v927_v39 = vpop.f32.mrf.mxu0  ;;  %v951_v40 = vpop.f32.mrf.mxu1 }
 0x125   : > { %v675_v41 = vadd.f32 %v926_v37, %v1425_v35  ;;  %v683_v42 = vadd.f32 %v950_v38, %v1425_v35 }
 0x126   : > { %v928_v43 = vpop.f32.mrf.mxu0  ;;  %v952_v44 = vpop.f32.mrf.mxu1 }
 0x127   : > { %v691_v45 = vmax.f32 %v675_v41, 0.0  ;;  %v699_v46 = vmax.f32 %v683_v42, 0.0  ;;  %v929_v47 = vadd.f32 %v928_v43, %v927_v39  ;;  %v953_v48 = vadd.f32 %v952_v44, %v951_v40 }
 0x128   : > { %v930_v49 = vpop.f32.mrf.mxu0  ;;  %v954_v50 = vpop.f32.mrf.mxu1 }
 0x129   : > { %707 = vst [vmem:[%s1431_s24] sm:$0xff] %v691_v45  ;;  %715 = vst [vmem:[%s1431_s24 + $0x40] sm:$0xff] %v699_v46  ;;  %v676_v51 = vadd.f32 %v929_v47, %v1425_v35  ;;  %v684_v52 = vadd.f32 %v953_v48, %v1425_v35 }
 0x12a   : > { %v931_v53 = vpop.f32.mrf.mxu0  ;;  %v955_v54 = vpop.f32.mrf.mxu1 }
 0x12b   : > { %v692_v55 = vmax.f32 %v676_v51, 0.0  ;;  %v700_v56 = vmax.f32 %v684_v52, 0.0  ;;  %v932_v57 = vadd.f32 %v931_v53, %v930_v49  ;;  %v956_v58 = vadd.f32 %v955_v54, %v954_v50 }
 0x12c   : > { %v933_v59 = vpop.f32.mrf.mxu0  ;;  %v957_v60 = vpop.f32.mrf.mxu1 }
 0x12d   : > { %708 = vst [vmem:[%s1431_s24 + $0x8] sm:$0xff] %v692_v55  ;;  %716 = vst [vmem:[%s1431_s24 + $0x48] sm:$0xff] %v700_v56  ;;  %v677_v61 = vadd.f32 %v932_v57, %v1425_v35  ;;  %v685_v62 = vadd.f32 %v956_v58, %v1425_v35 }
 0x12e   : > { %v934_v63 = vpop.f32.mrf.mxu0  ;;  %v958_v0 = vpop.f32.mrf.mxu1 }
 0x12f   : > { %v693_v1 = vmax.f32 %v677_v61, 0.0  ;;  %v701_v2 = vmax.f32 %v685_v62, 0.0  ;;  %v935_v3 = vadd.f32 %v934_v63, %v933_v59  ;;  %v959_v4 = vadd.f32 %v958_v0, %v957_v60 }
 0x130   : > { %v936_v5 = vpop.f32.mrf.mxu0  ;;  %v960_v6 = vpop.f32.mrf.mxu1 }
 0x131   : > { %709 = vst [vmem:[%s1431_s24 + $0x10] sm:$0xff] %v693_v1  ;;  %717 = vst [vmem:[%s1431_s24 + $0x50] sm:$0xff] %v701_v2  ;;  %v678_v7 = vadd.f32 %v935_v3, %v1425_v35  ;;  %v686_v8 = vadd.f32 %v959_v4, %v1425_v35 }
 0x132   : > { %v937_v9 = vpop.f32.mrf.mxu0  ;;  %v961_v10 = vpop.f32.mrf.mxu1 }
 0x133   : > { %v694_v11 = vmax.f32 %v678_v7, 0.0  ;;  %v702_v12 = vmax.f32 %v686_v8, 0.0  ;;  %v938_v13 = vadd.f32 %v937_v9, %v936_v5  ;;  %v962_v14 = vadd.f32 %v961_v10, %v960_v6 }
 0x134   : > { %v939_v15 = vpop.f32.mrf.mxu0  ;;  %v963_v16 = vpop.f32.mrf.mxu1 }
 0x135   : > { %710 = vst [vmem:[%s1431_s24 + $0x18] sm:$0xff] %v694_v11  ;;  %718 = vst [vmem:[%s1431_s24 + $0x58] sm:$0xff] %v702_v12  ;;  %v679_v17 = vadd.f32 %v938_v13, %v1425_v35  ;;  %v687_v18 = vadd.f32 %v962_v14, %v1425_v35 }
 0x136   : > { %v940_v19 = vpop.f32.mrf.mxu0  ;;  %v964_v20 = vpop.f32.mrf.mxu1 }
 0x137   : > { %v695_v21 = vmax.f32 %v679_v17, 0.0  ;;  %v703_v22 = vmax.f32 %v687_v18, 0.0  ;;  %v941_v23 = vadd.f32 %v940_v19, %v939_v15  ;;  %v965_v24 = vadd.f32 %v964_v20, %v963_v16 }
 0x138   : > { %v942_v25 = vpop.f32.mrf.mxu0  ;;  %v966_v26 = vpop.f32.mrf.mxu1 }
 0x139   : > { %711 = vst [vmem:[%s1431_s24 + $0x20] sm:$0xff] %v695_v21  ;;  %719 = vst [vmem:[%s1431_s24 + $0x60] sm:$0xff] %v703_v22  ;;  %v680_v27 = vadd.f32 %v941_v23, %v1425_v35  ;;  %v688_v28 = vadd.f32 %v965_v24, %v1425_v35 }
 0x13a   : > { %v943_v29 = vpop.f32.mrf.mxu0  ;;  %v967_v30 = vpop.f32.mrf.mxu1 }
 0x13b   : > { %v696_v31 = vmax.f32 %v680_v27, 0.0  ;;  %v704_v32 = vmax.f32 %v688_v28, 0.0  ;;  %v944_v33 = vadd.f32 %v943_v29, %v942_v25  ;;  %v968_v34 = vadd.f32 %v967_v30, %v966_v26 }
 0x13c   : > { %v945_v36 = vpop.f32.mrf.mxu0  ;;  %v969_v37 = vpop.f32.mrf.mxu1 }
 0x13d   : > { %712 = vst [vmem:[%s1431_s24 + $0x28] sm:$0xff] %v696_v31  ;;  %720 = vst [vmem:[%s1431_s24 + $0x68] sm:$0xff] %v704_v32  ;;  %v681_v38 = vadd.f32 %v944_v33, %v1425_v35  ;;  %v689_v39 = vadd.f32 %v968_v34, %v1425_v35 }
 0x13e   : > { %v946_v40 = vpop.f32.mrf.mxu0  ;;  %v970_v41 = vpop.f32.mrf.mxu1 }
 0x13f   : > { %v697_v42 = vmax.f32 %v681_v38, 0.0  ;;  %v705_v43 = vmax.f32 %v689_v39, 0.0  ;;  %v947_v44 = vadd.f32 %v946_v40, %v945_v36  ;;  %v971_v45 = vadd.f32 %v970_v41, %v969_v37 }
 0x141   : > { %713 = vst [vmem:[%s1431_s24 + $0x30] sm:$0xff] %v697_v42  ;;  %721 = vst [vmem:[%s1431_s24 + $0x70] sm:$0xff] %v705_v43  ;;  %v682_v46 = vadd.f32 %v947_v44, %v1425_v35  ;;  %v690_v47 = vadd.f32 %v971_v45, %v1425_v35 }
 0x143   : > { %v698_v48 = vmax.f32 %v682_v46, 0.0  ;;  %v706_v49 = vmax.f32 %v690_v47, 0.0 }
 0x145   : > { %714 = vst [vmem:[%s1431_s24 + $0x38] sm:$0xff] %v698_v48  ;;  %722 = vst [vmem:[%s1431_s24 + $0x78] sm:$0xff] %v706_v49 }
 0x146   : > { %1174 = shalt.err (!%p1171_p3)
}
 0x147   : > { %s1175_s18 = scalar_lea.hbm %s1466_s6, 2048  ;;  %s1179_s30 = scalar_lea.hbm %s1520_s3, 8192 }
 0x148   : > { %p1176_p5 = scmp.ne.s32.totalorder %s1466_s6, %s1175_s18  ;;  %p1180_p6 = scmp.lt.s32.totalorder %s1466_s6, %s1520_s3 }
 0x149   : > { %p1181_p11 = scmp.lt.s32.totalorder %s1179_s30, %s1175_s18 }
 0x14a   : > { %p1177_p7 = pnand %p1176_p5, %p1531_p4 }
 0x14b   : > { %p1182_p10 = por %p1181_p11, %p1180_p6 }
 0x14c   : > { %p1178_p9 = pneg %p1177_p7 }
 0x14e   : > { %p1183_p1 = pnand %p1182_p10, %p1178_p9 }
 0x150   : > { %1186 = shalt.err (!%p1183_p1)
}
 0x151   : > { %s1254_s24 = smov 128   ;;  %s1255_s29 = smov 8  }
 0x152   : > { %994 = dma.vmem_to_hbm [thread:$0]  (%p1531_p4), %s1468_s4, 2048, %s1466_s6, %s724_s15, %s1254_s24, %s1254_s24, %s1255_s29  }
 0x153 PF: > { %p1011_p8 = scmp.ge.s32.totalorder %s1245_s17, 2  ;;  %s753_s21 = sand.u32 1, %s1225_s12  }
 0x154   : > { %p1532_p12 = scmp.ne.s32.totalorder %s1525_s23, 0  ;;  %s754_s5 = scalar_lea.sflag [#allocation5], %s753_s21 }
 0x156   : > { %p1005_p13 = pnand %p1011_p8, %p1532_p12 }
 0x158   : > { %p1006_p0 = pneg %p1005_p13 }
 0x15a   : > { %1220 = dma.done.wait (%p1006_p0), %s754_s5, 2048  }
 0x15b   : > { %1222 = vsyncadd (%p1006_p0), %s754_s5, 4294965248  ;;  %s20_s17 = sadd.s32 1, %s1245_s17   ;;  %s1533_s12 = smov %s1229_s13 }
 0x15c   : > { %p17_p2 = scmp.ge.s32.totalorder %s20_s17, 6   ;;  %s1534_s13 = smov %s1233_s14 }
 0x15d   : > { %s1535_s14 = smov %s1371_s19  ;;  %s1536_s15 = smov %s1241_s16 }
 0x15e   : > { %s1537_s16 = smov %s1539_s28  ;;  %19 = sbr.rel (!%p17_p2) target bundleno = 7 (0x7), region = 93 }
 0x163   :  { %759 = vsyncpa [#allocation4], 1 }
 0x164   :  { %761 = vsyncpa [#allocation4 + $0x1], 1 }
 0x165   :  { %762 = vsyncpa [#allocation7], 1 }
 0x166   :  { %763 = vsyncpa [#allocation5], 1 }
 0x167   :  { %765 = vsyncpa [#allocation5 + $0x1], 1 }

</bundles_post_ra>
